<compile_context>
chip_gen: v6e
topology: v6e:2x2x1
jax: 0.10.0
libtpu: 0.0.40
codegen_flags: <defaults>
</compile_context>

<pallas_src>
import jax
import jax.numpy as jnp
from jax.experimental import pallas as pl
from jax.experimental.pallas import tpu as pltpu

BN_EPS = 1e-5           # PyTorch BatchNorm1d eps
NORM_EPS = 1e-12        # tiny eps for rsqrt of the squared L2 norm

APPLY_TILE_CAP = 2048   # rows
STATS_TILE_CAP = 4096   # rows


def _cdiv(a, b):
    return -(-a // b)


def _round_up(x, m):
    return ((x + m - 1) // m) * m


def _vmem_budgets():
    """(live_bytes_budget, scoped_vmem_limit), generation aware.

    v5e/v6e: 128 MiB physical VMEM -> 32 MiB live / 64 MiB scoped limit.
    v7x:      64 MiB physical      -> 16 MiB live / 32 MiB scoped limit.
    Unknown: conservative (v7x) numbers.
    """
    try:
        info = pltpu.get_tpu_info()
        vmem = getattr(info, "vmem_capacity_bytes", None)
    except Exception:
        vmem = None
    if vmem is not None and vmem >= (96 << 20):
        return 32 << 20, 64 << 20
    return 16 << 20, 32 << 20


def _choose_tile(B, F, bytes_per_row, live_budget, cap):
    """Largest batch tile (multiple of 8) whose live bytes fit the budget."""
    max_rows = live_budget // max(bytes_per_row, 1)
    max_rows = max(8, (max_rows // 8) * 8)
    tile = min(_round_up(B, 8), max_rows, cap)
    return max(8, (tile // 8) * 8)


# ----------------------------------------------------------------------------
# Shared in-kernel scaling math (L2 row-normalize + "fixed"/"logistic" factor)
# ----------------------------------------------------------------------------
def _scale_rows(y, method, scale_params_ref):
    sumsq = jnp.sum(y * y, axis=-1, keepdims=True)
    inv_norm = jax.lax.rsqrt(sumsq + NORM_EPS)   # single EUP op; zero rows -> 0
    if method == "fixed":
        factor = scale_params_ref[0]                      # scalar alpha
    elif method == "logistic":
        w = scale_params_ref[0]
        b = scale_params_ref[1]
        norm = sumsq * inv_norm                           # ~= ||y||_2
        factor = jax.nn.sigmoid(w * norm + b)             # per-row factor
    else:
        raise ValueError(f"unknown scaling method: {method}")
    return factor * y * inv_norm


# ----------------------------------------------------------------------------
# Path A: fused single-pass kernel — whole batch resident in VMEM.
# Computes batch mean/var, applies BN + L2-normalize + scaling in one launch.
# Block shape == full array shape, so no padding / ragged handling is needed.
# ----------------------------------------------------------------------------
def _make_fused_kernel(batch_normalize, method, true_b):
    def kernel(*refs):
        idx = 0
        scale_params_ref = None
        if method is not None:
            scale_params_ref = refs[idx]; idx += 1
        x_ref = refs[idx]; idx += 1
        o_ref = refs[idx]

        y = x_ref[...].astype(jnp.float32)
        if batch_normalize:
            inv_b = 1.0 / float(true_b)
            mean = jnp.sum(y, axis=0, keepdims=True) * inv_b
            ex2 = jnp.sum(y * y, axis=0, keepdims=True) * inv_b
            var = jnp.maximum(ex2 - mean * mean, 0.0)     # guard cancellation
            y = (y - mean) * jax.lax.rsqrt(var + BN_EPS)

        if method is None:
            o_ref[...] = y.astype(o_ref.dtype)
        else:
            o_ref[...] = _scale_rows(y, method, scale_params_ref).astype(o_ref.dtype)

    return kernel


def _fused_forward(x, scale_params, *, batch_normalize, method, vmem_limit):
    B, F = x.shape
    in_specs = []
    args = []
    if method is not None:
        in_specs.append(pl.BlockSpec(memory_space=pltpu.MemorySpace.SMEM))
        args.append(scale_params)
    in_specs.append(pl.BlockSpec((B, F), lambda i: (0, 0)))
    args.append(x)

    return pl.pallas_call(
        _make_fused_kernel(batch_normalize, method, B),
        out_shape=jax.ShapeDtypeStruct((B, F), x.dtype),
        grid_spec=pltpu.PrefetchScalarGridSpec(
            num_scalar_prefetch=0,
            grid=(1,),
            in_specs=in_specs,
            out_specs=pl.BlockSpec((B, F), lambda i: (0, 0))),
        compiler_params=pltpu.CompilerParams(
            dimension_semantics=("arbitrary",),
            vmem_limit_bytes=vmem_limit),
    )(*args)


# ----------------------------------------------------------------------------
# Path B1: per-tile partial sums for batch statistics (multi-tile BN path).
# Fully "parallel" grid (megacore friendly).  Ragged last tile is masked
# against the true batch size.
# ----------------------------------------------------------------------------
def _bn_partial_stats(x, *, tile, vmem_limit):
    B, F = x.shape
    n_tiles = _cdiv(B, tile)
    ragged = (B % tile) != 0

    def kernel(x_ref, sum_ref, sumsq_ref):
        xf = x_ref[...].astype(jnp.float32)
        if ragged:
            # Rows past the true B in the (over-read) last tile are undefined
            # memory: mask them to 0 so sum/sumsq stay correct.
            row = jax.lax.broadcasted_iota(jnp.int32, xf.shape, 0)
            valid = (pl.program_id(0) * tile + row) < B
            xf = jnp.where(valid, xf, 0.0)
        sum_ref[...] = jnp.sum(xf, axis=0, keepdims=True)
        sumsq_ref[...] = jnp.sum(xf * xf, axis=0, keepdims=True)

    return pl.pallas_call(
        kernel,
        out_shape=(jax.ShapeDtypeStruct((n_tiles, F), jnp.float32),
                   jax.ShapeDtypeStruct((n_tiles, F), jnp.float32)),
        grid_spec=pltpu.PrefetchScalarGridSpec(
            num_scalar_prefetch=0,
            grid=(n_tiles,),
            in_specs=[pl.BlockSpec((tile, F), lambda i: (i, 0))],
            out_specs=(pl.BlockSpec((1, F), lambda i: (i, 0)),
                       pl.BlockSpec((1, F), lambda i: (i, 0)))),
        compiler_params=pltpu.CompilerParams(
            dimension_semantics=("parallel",),
            vmem_limit_bytes=vmem_limit),
    )(x)


# ----------------------------------------------------------------------------
# Path B2: fused BN-apply (precomputed scale/shift) + L2-normalize + scaling.
# Row-independent, so the ragged last block needs no mask: out-of-bounds rows
# of the last block are dropped on writeback.
# ----------------------------------------------------------------------------
def _make_apply_kernel(batch_normalize, method):
    def kernel(*refs):
        idx = 0
        scale_params_ref = None
        if method is not None:
            scale_params_ref = refs[idx]; idx += 1
        x_ref = refs[idx]; idx += 1
        bn_scale_ref = bn_shift_ref = None
        if batch_normalize:
            bn_scale_ref = refs[idx]; bn_shift_ref = refs[idx + 1]; idx += 2
        o_ref = refs[idx]

        y = x_ref[...].astype(jnp.float32)
        if batch_normalize:
            # (x - mean) * rsqrt(var + eps) folded into a single FMA.
            y = y * bn_scale_ref[...] + bn_shift_ref[...]

        if method is None:
            o_ref[...] = y.astype(o_ref.dtype)
        else:
            o_ref[...] = _scale_rows(y, method, scale_params_ref).astype(o_ref.dtype)

    return kernel


def _embed_apply(x, bn_scale, bn_shift, scale_params, *,
                 batch_normalize, method, tile, vmem_limit):
    B, F = x.shape
    n_tiles = _cdiv(B, tile)

    in_specs = []
    args = []
    if method is not None:
        in_specs.append(pl.BlockSpec(memory_space=pltpu.MemorySpace.SMEM))
        args.append(scale_params)
    in_specs.append(pl.BlockSpec((tile, F), lambda i: (i, 0)))
    args.append(x)
    if batch_normalize:
        in_specs.append(pl.BlockSpec((1, F), lambda i: (0, 0)))
        in_specs.append(pl.BlockSpec((1, F), lambda i: (0, 0)))
        args.extend([bn_scale, bn_shift])

    return pl.pallas_call(
        _make_apply_kernel(batch_normalize, method),
        out_shape=jax.ShapeDtypeStruct((B, F), x.dtype),
        grid_spec=pltpu.PrefetchScalarGridSpec(
            num_scalar_prefetch=0,
            grid=(n_tiles,),
            in_specs=in_specs,
            out_specs=pl.BlockSpec((tile, F), lambda i: (i, 0))),
        compiler_params=pltpu.CompilerParams(
            dimension_semantics=("parallel",),
            vmem_limit_bytes=vmem_limit),
    )(*args)


# ----------------------------------------------------------------------------
# Python wrapper mirroring the PyTorch module
# ----------------------------------------------------------------------------
class EmbeddingPallas:
    def __init__(self, n_features, batch_normalize=False, scale=None, key=None):
        self.n_features = n_features
        self.batch_normalize = batch_normalize
        self.scale = scale

        if scale == "fixed":
            # single learnable scalar, init to 1.0 (second slot unused)
            self.scale_params = jnp.array([1.0, 0.0], dtype=jnp.float32)
        elif scale == "logistic":
            # nn.Linear(1, 1): weight + bias
            key = jax.random.PRNGKey(0) if key is None else key
            kw, kb = jax.random.split(key)
            w = jax.random.uniform(kw, (), jnp.float32, -1.0, 1.0)
            b = jax.random.uniform(kb, (), jnp.float32, -1.0, 1.0)
            self.scale_params = jnp.stack([w, b]).astype(jnp.float32)
        elif scale is None:
            self.scale_params = None
        else:
            raise ValueError(f"unknown scaling method: {scale}")

    def __call__(self, x, *, _force_two_pass=False, _force_tile=None):
        B, F = x.shape
        assert F == self.n_features

        # Identity configuration: pure pass-through, no kernel launch.
        if not self.batch_normalize and self.scale is None:
            return x

        live_budget, vmem_limit = _vmem_budgets()
        itemsize = x.dtype.itemsize

        # --- Path A: whole batch fits VMEM -> single fused pass. ---
        # Budget: double-buffered in + out blocks plus ~2 f32 working copies.
        fused_bytes = B * F * (4 * itemsize + 8)
        if not _force_two_pass and fused_bytes <= live_budget:
            return _fused_forward(x, self.scale_params,
                                  batch_normalize=self.batch_normalize,
                                  method=self.scale, vmem_limit=vmem_limit)

        # --- Path B: tiled two-pass (stats pass only when BN is on). ---
        bn_scale = bn_shift = None
        if self.batch_normalize:
            # Stats outputs are (1, F) per tile (tiny): only the input tile is
            # live, so use a ~2x larger tile than the apply pass.
            stats_row_bytes = F * (2 * itemsize + 4)
            stats_tile = _choose_tile(B, F, stats_row_bytes, live_budget,
                                      STATS_TILE_CAP)
            if _force_tile is not None:
                stats_tile = min(stats_tile, _force_tile)
            psum, psumsq = _bn_partial_stats(x, tile=stats_tile,
                                             vmem_limit=vmem_limit)
            # Tiny (n_tiles, F) reduce + rsqrt epilogue in plain JAX.
            mean = jnp.sum(psum, axis=0, keepdims=True) / B
            ex2 = jnp.sum(psumsq, axis=0, keepdims=True) / B
            var = jnp.maximum(ex2 - mean * mean, 0.0)   # guard cancellation
            bn_scale = jax.lax.rsqrt(var + BN_EPS)
            bn_shift = -mean * bn_scale

        # Apply pass: 2x in bufs + 2x out bufs + ~2 f32 working copies per row.
        apply_row_bytes = F * (4 * itemsize + 8)
        apply_tile = _choose_tile(B, F, apply_row_bytes, live_budget,
                                  APPLY_TILE_CAP)
        if _force_tile is not None:
            apply_tile = min(apply_tile, _force_tile)
        return _embed_apply(x, bn_scale, bn_shift, self.scale_params,
                            batch_normalize=self.batch_normalize,
                            method=self.scale, tile=apply_tile,
                            vmem_limit=vmem_limit)

    @property
    def dimension(self):
        return self.n_features


# ----------------------------------------------------------------------------
# Pure-JAX reference for verification
# ----------------------------------------------------------------------------
def _reference(x, module):
    y = x.astype(jnp.float32)
    if module.batch_normalize:
        mean = jnp.mean(y, axis=0, keepdims=True)
        var = jnp.mean((y - mean) ** 2, axis=0, keepdims=True)  # biased
        y = (y - mean) / jnp.sqrt(var + BN_EPS)
    if module.scale is None:
        return y.astype(x.dtype)
    norm = jnp.sqrt(jnp.sum(y * y, axis=-1, keepdims=True))
    if module.scale == "fixed":
        factor = module.scale_params[0]
    else:
        factor = jax.nn.sigmoid(module.scale_params[0] * norm
                                + module.scale_params[1])
    return (factor * y / norm).astype(x.dtype)


if __name__ == "__main__":
    key = jax.random.PRNGKey(0)
    kx, kx2, kx3, kp = jax.random.split(key, 4)

    F = 256

    # 1) fused single-pass path: batch norm + fixed scaling
    x = jax.random.normal(kx, (16, F), dtype=jnp.float32)
    emb_fixed = EmbeddingPallas(F, batch_normalize=True, scale="fixed", key=kp)
    out_fixed = jax.block_until_ready(emb_fixed(x))
    assert out_fixed.shape == (16, F)
    assert bool(jnp.allclose(out_fixed, _reference(x, emb_fixed),
                             rtol=1e-3, atol=1e-4))

    # 2) logistic scaling, no batch norm, batch not a multiple of 8
    x2 = jax.random.normal(kx2, (13, F), dtype=jnp.float32)
    emb_logistic = EmbeddingPallas(F, batch_normalize=False, scale="logistic",
                                   key=kp)
    out_logistic = jax.block_until_ready(emb_logistic(x2))
    assert out_logistic.shape == (13, F)
    assert bool(jnp.allclose(out_logistic, _reference(x2, emb_logistic),
                             rtol=1e-3, atol=1e-4))

    # 3) default config: identity short-circuit (no kernel launch)
    emb_id = EmbeddingPallas(F)
    out_id = jax.block_until_ready(emb_id(x))
    assert out_id.shape == (16, F)
    assert bool(jnp.allclose(out_id, x))

    # 4) forced tiled two-pass path (stats mask + ragged last apply tile)
    x3 = jax.random.normal(kx3, (20, F), dtype=jnp.float32)
    emb_bn = EmbeddingPallas(F, batch_normalize=True, scale="logistic", key=kp)
    out_bn = jax.block_until_ready(emb_bn(x3, _force_two_pass=True,
                                          _force_tile=8))
    assert out_bn.shape == (20, F)
    assert bool(jnp.allclose(out_bn, _reference(x3, emb_bn),
                             rtol=1e-3, atol=1e-4))

    print("KERNEL_OK")
</pallas_src>

<mosaic_0001>
module attributes {stable_mosaic.version = 11 : i64} {
  func.func @kernel(%arg0: i32, %arg1: memref<2xf32, #tpu.memory_space<smem>>, %arg2: memref<16x256xf32, #tpu.memory_space<vmem>>, %arg3: memref<16x256xf32, #tpu.memory_space<vmem>>) attributes {dimension_semantics = [#tpu.dimension_semantics<arbitrary>], iteration_bounds = array<i64: 1>, scalar_prefetch = 0 : i64, scratch_operands = 0 : i64, tpu.core_type = #tpu.core_type<tc>, window_params = [{transform_indices = @transform_0, window_bounds = array<i64: 2>}, {pipeline_mode = #tpu.pipeline_mode<synchronous>, transform_indices = @transform_1, window_bounds = array<i64: 16, 256>}, {pipeline_mode = #tpu.pipeline_mode<synchronous>, transform_indices = @transform_2, window_bounds = array<i64: 16, 256>}]} {
    %c0 = arith.constant 0 : index
    %c0_0 = arith.constant 0 : index
    %0 = vector.load %arg2[%c0, %c0_0] : memref<16x256xf32, #tpu.memory_space<vmem>>, vector<16x256xf32>
    %cst = arith.constant dense<0.000000e+00> : vector<256xf32>
    %1 = vector.multi_reduction <add>, %0, %cst [0] : vector<16x256xf32> to vector<256xf32>
    %2 = vector.shape_cast %1 : vector<256xf32> to vector<1x256xf32>
    %cst_1 = arith.constant 6.250000e-02 : f32
    %3 = vector.broadcast %cst_1 : f32 to vector<1x256xf32>
    %4 = arith.mulf %2, %3 : vector<1x256xf32>
    %5 = arith.mulf %0, %0 : vector<16x256xf32>
    %cst_2 = arith.constant dense<0.000000e+00> : vector<256xf32>
    %6 = vector.multi_reduction <add>, %5, %cst_2 [0] : vector<16x256xf32> to vector<256xf32>
    %7 = vector.shape_cast %6 : vector<256xf32> to vector<1x256xf32>
    %cst_3 = arith.constant 6.250000e-02 : f32
    %8 = vector.broadcast %cst_3 : f32 to vector<1x256xf32>
    %9 = arith.mulf %7, %8 : vector<1x256xf32>
    %10 = arith.mulf %4, %4 : vector<1x256xf32>
    %11 = arith.subf %9, %10 : vector<1x256xf32>
    %cst_4 = arith.constant 0.000000e+00 : f32
    %12 = vector.broadcast %cst_4 : f32 to vector<1x256xf32>
    %13 = arith.maximumf %11, %12 : vector<1x256xf32>
    %14 = vector.broadcast %4 : vector<1x256xf32> to vector<16x256xf32>
    %15 = arith.subf %0, %14 : vector<16x256xf32>
    %cst_5 = arith.constant 9.99999974E-6 : f32
    %16 = vector.broadcast %cst_5 : f32 to vector<1x256xf32>
    %17 = arith.addf %13, %16 : vector<1x256xf32>
    %18 = math.rsqrt %17 : vector<1x256xf32>
    %19 = vector.broadcast %18 : vector<1x256xf32> to vector<16x256xf32>
    %20 = arith.mulf %15, %19 : vector<16x256xf32>
    %21 = arith.mulf %20, %20 : vector<16x256xf32>
    %cst_6 = arith.constant dense<0.000000e+00> : vector<16xf32>
    %22 = vector.multi_reduction <add>, %21, %cst_6 [1] : vector<16x256xf32> to vector<16xf32>
    %23 = vector.shape_cast %22 : vector<16xf32> to vector<16x1xf32>
    %cst_7 = arith.constant 9.99999996E-13 : f32
    %24 = vector.broadcast %cst_7 : f32 to vector<16x1xf32>
    %25 = arith.addf %23, %24 : vector<16x1xf32>
    %26 = math.rsqrt %25 : vector<16x1xf32>
    %c0_8 = arith.constant 0 : index
    %27 = memref.load %arg1[%c0_8] : memref<2xf32, #tpu.memory_space<smem>>
    %28 = vector.broadcast %27 : f32 to vector<16x256xf32>
    %29 = arith.mulf %28, %20 : vector<16x256xf32>
    %30 = vector.broadcast %26 : vector<16x1xf32> to vector<16x256xf32>
    %31 = arith.mulf %29, %30 : vector<16x256xf32>
    %c0_9 = arith.constant 0 : index
    %c0_10 = arith.constant 0 : index
    %32 = vector.load %arg3[%c0_9, %c0_10] : memref<16x256xf32, #tpu.memory_space<vmem>>, vector<16x256xf32>
    tpu.vector_store %arg3[%c0_9, %c0_10], %31 {strides = array<i32>} : memref<16x256xf32, #tpu.memory_space<vmem>>, vector<16x256xf32>,
    return
  }
  func.func @transform_0(%arg0: i32) -> i32 {
    %c0_i32 = arith.constant 0 : i32
    %c0_i32_0 = arith.constant 0 : i32
    return %c0_i32 : i32
  }
  func.func @transform_1(%arg0: i32) -> (i32, i32) {
    %c0_i32 = arith.constant 0 : i32
    %c0_i32_0 = arith.constant 0 : i32
    %c0_i32_1 = arith.constant 0 : i32
    return %c0_i32, %c0_i32_0 : i32, i32
  }
  func.func @transform_2(%arg0: i32) -> (i32, i32) {
    %c0_i32 = arith.constant 0 : i32
    %c0_i32_0 = arith.constant 0 : i32
    %c0_i32_1 = arith.constant 0 : i32
    return %c0_i32, %c0_i32_0 : i32, i32
  }
}

</mosaic_0001>

<bundles_post_ra>
// kernel: tpu_custom_call.1
= control target key start
LH: loop header
LB: loop body
LE: loop exit
PB: predicated region body
PF: predicated region fallthrough
CT: control target
= control target key end

     0   :  { %7 = vsyncpa [#allocation5], 0  ;;  %s243_s0 = inlined_call_operand.hbm [shape: f32[2], index: 0, kind: input, shape index: {}]   ;;  %s244_s1 = inlined_call_operand.hbm [shape: f32[16,256], index: 1, kind: input, shape index: {}]   ;;  %s245_s2 = inlined_call_operand.hbm [shape: f32[16,256], index: 2, kind: output, shape index: {}]  }
   0x1   :  { %8 = vsyncpa [#allocation3], 0 }
   0x2   :  { %9 = vsyncpa [#allocation4], 0  ;;  %s208_s9 = smov [#allocation2]   ;;  %s209_s12 = smov [#allocation6]  }
   0x3   :  { %17 = dma.hbm_to_smem %s243_s0, 16, %s208_s9, [#allocation5]  }
   0x4   :  { %s23_s13 = sshll.u32 %s209_s12, 4  ;;  %s24_s13 = int_to_ptr.vmem [resolvable:$true] %s23_s13 }
   0x5   :  { %s170_s14 = scalar_lea.vmem %s24_s13, 512  ;;  %p175_p1 = scmp.lt.s32.totalorder %s24_s13, %s24_s13 }
   0x6   :  { %p171_p0 = scmp.ne.s32.totalorder %s24_s13, %s170_s14  ;;  %p176_p2 = scmp.lt.s32.totalorder %s170_s14, %s170_s14 }
   0x8   :  { %p177_p3 = por %p176_p2, %p175_p1 }
   0xa   :  { %p178_p4 = pnand %p177_p3, %p171_p0 }
   0xc   :  { %181 = shalt.err (!%p178_p4)
}
   0xd   :  { %s210_s15 = smov 256   ;;  %s211_s16 = smov 16  }
   0xe   :  { %29 = dma.hbm_to_vmem [thread:$0]  %s244_s1, 512, %s24_s13, [#allocation3], %s210_s15, %s210_s15, %s211_s16  }
   0xf   :  { %202 = dma.done.wait [#allocation5], 16  }
  0x10   :  { %203 = vsyncadd [#allocation5], 4294967280 }
  0x11   :  { %204 = dma.done.wait [#allocation3], 512  }
  0x12   :  { %205 = vsyncadd [#allocation3], 4294966784 }
  0x13   :  { %36 = sfence }
  0x14   :  { %v37_v0 = vld [vmem:[#allocation6] sm:$0xff]  ;;  %v38_v1 = vld [vmem:[#allocation6 + $0x8] sm:$0xff]  ;;  %v39_v2 = vld [vmem:[#allocation6 + $0x10] sm:$0xff]  ;;  %s109_s0 = sld [smem:[#allocation2]]  ;;  %s212_s1 = smov [#allocation7]  }
  0x15   :  { %v40_v3 = vld [vmem:[#allocation6 + $0x18] sm:$0xff]  ;;  %v41_v4 = vadd.f32 %v39_v2, %v37_v0  ;;  %v57_v5 = vmul.f32 %v37_v0, %v37_v0  ;;  %v58_v6 = vmul.f32 %v38_v1, %v38_v1  ;;  %v59_v7 = vmul.f32 %v39_v2, %v39_v2  ;;  %s128_s19 = sshll.u32 %s212_s1, 4  ;;  %s129_s19 = int_to_ptr.vmem [resolvable:$true] %s128_s19 }
  0x16   :  { %v48_v8 = vadd.f32 %v40_v3, %v38_v1  ;;  %v60_v9 = vmul.f32 %v40_v3, %v40_v3  ;;  %s182_s20 = scalar_lea.vmem %s129_s19, 512  ;;  %p187_p6 = scmp.lt.s32.totalorder %s129_s19, %s129_s19 }
  0x17   :  { %v42_v10 = vrot.slane %v41_v4, 4  ;;  %v61_v11 = vadd.f32 %v59_v7, %v57_v5  ;;  %p183_p5 = scmp.ne.s32.totalorder %s129_s19, %s182_s20  ;;  %p188_p7 = scmp.lt.s32.totalorder %s182_s20, %s182_s20 }
  0x18   :  { %v49_v12 = vrot.slane %v48_v8, 4  ;;  %v68_v13 = vadd.f32 %v60_v9, %v58_v6 }
  0x19   :  { %v43_v14 = vadd.f32 %v42_v10, %v41_v4  ;;  %v62_v15 = vrot.slane %v61_v11, 4  ;;  %p189_p8 = por %p188_p7, %p187_p6 }
  0x1a   :  { %v50_v16 = vadd.f32 %v49_v12, %v48_v8  ;;  %v69_v17 = vrot.slane %v68_v13, 4 }
  0x1b   :  { %v44_v18 = vrot.slane %v43_v14, 2  ;;  %v63_v19 = vadd.f32 %v62_v15, %v61_v11  ;;  %p190_p9 = pnand %p189_p8, %p183_p5 }
  0x1c   :  { %v51_v20 = vrot.slane %v50_v16, 2  ;;  %v70_v21 = vadd.f32 %v69_v17, %v68_v13 }
  0x1d   :  { %v45_v22 = vadd.f32 %v44_v18, %v43_v14  ;;  %v64_v23 = vrot.slane %v63_v19, 2 }
  0x1e   :  { %v52_v24 = vadd.f32 %v51_v20, %v50_v16  ;;  %v71_v25 = vrot.slane %v70_v21, 2 }
  0x1f   :  { %v46_v26 = vrot.slane %v45_v22, 1  ;;  %v65_v27 = vadd.f32 %v64_v23, %v63_v19 }
  0x20   :  { %v53_v28 = vrot.slane %v52_v24, 1  ;;  %v72_v29 = vadd.f32 %v71_v25, %v70_v21 }
  0x21   :  { %v47_v30 = vadd.f32 %v46_v26, %v45_v22  ;;  %v66_v31 = vrot.slane %v65_v27, 1 }
  0x22   :  { %v54_v32 = vadd.f32 %v53_v28, %v52_v24  ;;  %v73_v33 = vrot.slane %v72_v29, 1 }
  0x23   :  { %v55_v34 = vmul.f32 0.0625, %v47_v30  ;;  %v67_v35 = vadd.f32 %v66_v31, %v65_v27 }
  0x24   :  { %v56_v36 = vmul.f32 0.0625, %v54_v32  ;;  %v74_v37 = vadd.f32 %v73_v33, %v72_v29 }
  0x25   :  { %v75_v38 = vmul.f32 0.0625, %v67_v35  ;;  %v77_v39 = vmul.f32 %v55_v34, %v55_v34  ;;  %v83_v48 = vsub.f32 %v37_v0, %v55_v34  ;;  %v85_v49 = vsub.f32 %v39_v2, %v55_v34 }
  0x26   :  { %v76_v40 = vmul.f32 0.0625, %v74_v37  ;;  %v78_v41 = vmul.f32 %v56_v36, %v56_v36  ;;  %v84_v50 = vsub.f32 %v38_v1, %v56_v36  ;;  %v86_v51 = vsub.f32 %v40_v3, %v56_v36 }
  0x27   :  { %v79_v42 = vsub.f32 %v75_v38, %v77_v39  ;;  %v110_v2 = vstv %s109_s0 }
  0x28   :  { %v80_v43 = vsub.f32 %v76_v40, %v78_v41 }
  0x29   :  { %v81_v44 = vmax.f32 %v79_v42, 0.0 }
  0x2a   :  { %v82_v45 = vmax.f32 %v80_v43, 0.0 }
  0x2b   :  { %v87_v46 = vadd.f32 1e-05, %v81_v44 }
  0x2c   :  { %v88_v47 = vadd.f32 1e-05, %v82_v45 }
  0x2d   :  { %146 = vrsqrt.f32 %v87_v46 }
  0x2e   :  { %148 = vrsqrt.f32 %v88_v47 }
  0x3a   :  { %v147_v52 = vpop.eup %146 }
  0x3b   :  { %v149_v53 = vpop.eup %148  ;;  %v91_v54 = vmul.f32 %v147_v52, %v83_v48  ;;  %v93_v55 = vmul.f32 %v147_v52, %v85_v49 }
  0x3c   :  { %v92_v56 = vmul.f32 %v149_v53, %v84_v50  ;;  %v94_v57 = vmul.f32 %v149_v53, %v86_v51 }
  0x3d   :  { %v95_v58 = vmul.f32 %v91_v54, %v91_v54  ;;  %v97_v60 = vmul.f32 %v93_v55, %v93_v55  ;;  %v111_v3 = vmul.f32 %v110_v2, %v91_v54  ;;  %v113_v8 = vmul.f32 %v110_v2, %v93_v55 }
  0x3e   :  { %v96_v59 = vmul.f32 %v92_v56, %v92_v56  ;;  %v98_v61 = vmul.f32 %v94_v57, %v94_v57  ;;  %v112_v6 = vmul.f32 %v110_v2, %v92_v56  ;;  %v114_v9 = vmul.f32 %v110_v2, %v94_v57 }
  0x40   :  { %v99_v62 = vadd.f32 %v96_v59, %v95_v58  ;;  %v102_v63 = vadd.f32 %v98_v61, %v97_v60 }
  0x42   :  { %100 = vadd.xlane.f32.xlu0 %v99_v62 }
  0x46   :  { %103 = vadd.xlane.f32.xlu0 %v102_v63 }
  0xcb   :  { %v101_v4 = vpop.xlane.xlu0 %100 }
  0xcc   :  { %v105_v5 = vadd.f32 1e-12, %v101_v4 }
  0xce   :  { %150 = vrsqrt.f32 %v105_v5 }
  0xcf   :  { %v104_v0 = vpop.xlane.xlu0 %103 }
  0xd0   :  { %v106_v1 = vadd.f32 1e-12, %v104_v0 }
  0xd2   :  { %152 = vrsqrt.f32 %v106_v1 }
  0xdb   :  { %v151_v7 = vpop.eup %150 }
  0xdc   :  { %v115_v10 = vmul.f32 %v151_v7, %v111_v3  ;;  %v116_v11 = vmul.f32 %v151_v7, %v112_v6 }
  0xde   :  { %119 = vst [vmem:[#allocation7] sm:$0xff] %v115_v10  ;;  %120 = vst [vmem:[#allocation7 + $0x8] sm:$0xff] %v116_v11 }
  0xdf   :  { %v153_v12 = vpop.eup %152 }
  0xe0   :  { %v117_v13 = vmul.f32 %v153_v12, %v113_v8  ;;  %v118_v14 = vmul.f32 %v153_v12, %v114_v9 }
  0xe2   :  { %121 = vst [vmem:[#allocation7 + $0x10] sm:$0xff] %v117_v13  ;;  %122 = vst [vmem:[#allocation7 + $0x18] sm:$0xff] %v118_v14 }
  0xe3   :  { %193 = shalt.err (!%p190_p9)
}
  0xe4   :  { %134 = dma.vmem_to_hbm [thread:$0]  %s129_s19, 512, %s245_s2, [#allocation4], %s210_s15, %s210_s15, %s211_s16  }
  0xe5   :  { %206 = dma.done.wait [#allocation4], 512  }
  0xe6   :  { %207 = vsyncadd [#allocation4], 4294966784 }
  0xe7   :  { %138 = vsyncpa [#allocation3], 1 }
  0xe8   :  { %139 = vsyncpa [#allocation4], 1 }
  0xe9   :  { %140 = vsyncpa [#allocation5], 1 }

</bundles_post_ra>
